<compile_context>
chip_gen: v7x
topology: tpu7x:2x2x1
jax: 0.10.0
libtpu: 0.0.40
codegen_flags: <defaults>
</compile_context>

<pallas_src>
import functools
import math

import jax
import jax.numpy as jnp
from jax.experimental import pallas as pl
from jax.experimental.pallas import tpu as pltpu

_LANES = 128
_MAX_TILE_ROWS = 16384          # 16384 x 128 x 4B = 8 MiB per f32 block
_SINGLE_BLOCK_BYTES = 256 * 1024  # inputs at/below this run as one block
_VMEM_LIMIT_BYTES = 48 * 1024 * 1024  # safe on v5e/v6e (128 MiB) and v7x (64 MiB)


def _smooth_mapping_kernel(x_ref, o_ref, *, ln_base):
    # Upcast to f32 (no-op for f32 inputs): keeps precision for bf16 and
    # avoids the missing bf16 VPU/EUP datapath on v5e.
    x = x_ref[...].astype(jnp.float32)
    t = x * jnp.float32(ln_base)
    # base**x - base**(-x): two EUP exps, otherwise memory-bound streaming.
    o_ref[...] = (jnp.exp(t) - jnp.exp(-t)).astype(o_ref.dtype)


def _round_up(a: int, m: int) -> int:
    return -(-a // m) * m


def smooth_mapping(x: jax.Array, base: float) -> jax.Array:
    """Elementwise base**x - base**(-x), computed in a Pallas TPU kernel."""
    orig_shape = x.shape
    dtype = x.dtype
    itemsize = jnp.dtype(dtype).itemsize
    ln_base = math.log(float(base))  # constant-folded at trace time

    n = x.size
    rows = -(-n // _LANES)            # ceil(n / 128)
    n_lane_padded = rows * _LANES
    needs_pad = n_lane_padded != n    # only when n isn't lane-aligned

    x_flat = x.reshape(-1)
    if needs_pad:
        x_flat = jnp.pad(x_flat, (0, n_lane_padded - n))
    x2d = x_flat.reshape(rows, _LANES)

    # Sublane granule: 8 rows for 32-bit, 16 for 16-bit, 32 for 8-bit dtypes.
    granule = 8 * max(1, 4 // itemsize)

    slab_bytes = rows * _LANES * itemsize
    if slab_bytes <= _SINGLE_BLOCK_BYTES:
        # Tiny input: one block equal to the full array (any row count legal).
        tile_rows = rows
    else:
        # At least 2 blocks (keeps both v7x TensorCores busy), capped at the
        # 8 MiB-per-f32-block tile that sits near the HBM roofline.
        half = _round_up(-(-rows // 2), granule)
        tile_rows = min(_MAX_TILE_ROWS, half)

    grid = pl.cdiv(rows, tile_rows)   # partial last block handled by Pallas

    kernel = functools.partial(_smooth_mapping_kernel, ln_base=ln_base)

    out2d = pl.pallas_call(
        kernel,
        out_shape=jax.ShapeDtypeStruct((rows, _LANES), dtype),
        grid=(grid,),
        in_specs=[pl.BlockSpec((tile_rows, _LANES), lambda i: (i, 0))],
        out_specs=pl.BlockSpec((tile_rows, _LANES), lambda i: (i, 0)),
        compiler_params=pltpu.CompilerParams(
            dimension_semantics=("parallel",),
            vmem_limit_bytes=_VMEM_LIMIT_BYTES,
        ),
        cost_estimate=pl.CostEstimate(
            flops=3 * n,
            transcendentals=2 * n,
            bytes_accessed=2 * n * itemsize,
        ),
    )(x2d)

    out_flat = out2d.reshape(-1)
    if needs_pad:
        out_flat = out_flat[:n]
    return out_flat.reshape(orig_shape)


if __name__ == "__main__":
    # `base` is a fixed (non-trainable) hyperparameter of the module.
    base = 2.0

    key = jax.random.PRNGKey(0)
    # NCHW input, small shapes: batch=2, channels=4, spatial=16.
    x = jax.random.normal(key, (2, 4, 16, 16), dtype=jnp.float32)

    out = smooth_mapping(x, base)
    out = jax.block_until_ready(out)

    # Sanity check against a plain-JAX reference of the PyTorch forward.
    ref = jnp.power(base, x) - 1.0 / jnp.power(base, x)
    assert out.shape == x.shape and out.dtype == x.dtype
    assert jnp.allclose(out, ref, atol=1e-5, rtol=1e-5)

    # Also exercise a non-lane-aligned, multi-block size to cover the
    # partial-last-block path.
    x2 = jax.random.normal(jax.random.PRNGKey(1), (3, 5, 17, 19), dtype=jnp.float32)
    out2 = jax.block_until_ready(smooth_mapping(x2, base))
    ref2 = jnp.power(base, x2) - 1.0 / jnp.power(base, x2)
    assert jnp.allclose(out2, ref2, atol=1e-5, rtol=1e-5)

    print("KERNEL_OK")
</pallas_src>

<mosaic_0001>
module attributes {stable_mosaic.version = 11 : i64} {
  func.func @_smooth_mapping_kernel(%arg0: i32, %arg1: memref<16x128xf32, #tpu.memory_space<vmem>>, %arg2: memref<16x128xf32, #tpu.memory_space<vmem>>) attributes {dimension_semantics = [#tpu.dimension_semantics<parallel>], iteration_bounds = array<i64: 1>, scalar_prefetch = 0 : i64, scratch_operands = 0 : i64, tpu.core_type = #tpu.core_type<tc>, window_params = [{transform_indices = @transform_0, window_bounds = array<i64: 16, 128>}, {transform_indices = @transform_1, window_bounds = array<i64: 16, 128>}]} {
    %c0 = arith.constant 0 : index
    %c0_0 = arith.constant 0 : index
    %0 = vector.load %arg1[%c0, %c0_0] : memref<16x128xf32, #tpu.memory_space<vmem>>, vector<16x128xf32>
    %cst = arith.constant 0.693147182 : f32
    %1 = vector.broadcast %cst : f32 to vector<16x128xf32>
    %2 = arith.mulf %0, %1 : vector<16x128xf32>
    %3 = math.exp %2 : vector<16x128xf32>
    %cst_1 = arith.constant 0.000000e+00 : f32
    %4 = vector.broadcast %cst_1 : f32 to vector<16x128xf32>
    %5 = arith.subf %4, %2 : vector<16x128xf32>
    %6 = math.exp %5 : vector<16x128xf32>
    %7 = arith.subf %3, %6 : vector<16x128xf32>
    %c0_2 = arith.constant 0 : index
    %c0_3 = arith.constant 0 : index
    %8 = vector.load %arg2[%c0_2, %c0_3] : memref<16x128xf32, #tpu.memory_space<vmem>>, vector<16x128xf32>
    tpu.vector_store %arg2[%c0_2, %c0_3], %7 {strides = array<i32>} : memref<16x128xf32, #tpu.memory_space<vmem>>, vector<16x128xf32>,
    return
  }
  func.func @transform_0(%arg0: i32) -> (i32, i32) {
    %c0_i32 = arith.constant 0 : i32
    %c0_i32_0 = arith.constant 0 : i32
    return %arg0, %c0_i32 : i32, i32
  }
  func.func @transform_1(%arg0: i32) -> (i32, i32) {
    %c0_i32 = arith.constant 0 : i32
    %c0_i32_0 = arith.constant 0 : i32
    return %arg0, %c0_i32 : i32, i32
  }
}

</mosaic_0001>

<bundles_post_ra>
// kernel: tpu_custom_call.1
= control target key start
LH: loop header
LB: loop body
LE: loop exit
PB: predicated region body
PF: predicated region fallthrough
CT: control target
= control target key end

     0   :  { %6 = vsyncpa [#allocation3], 0  ;;  %s162_s0 = inlined_call_operand.hbm [shape: f32[16,128], index: 0, kind: input, shape index: {}]   ;;  %s163_s1 = inlined_call_operand.hbm [shape: f32[16,128], index: 1, kind: output, shape index: {}]  }
   0x1   :  { %7 = vsyncpa [#allocation4], 0  ;;  %s118_s6 = smov [#allocation2]   ;;  %s70_s10 = scalar_lea.hbm %s162_s0, 256 }
   0x2   :  { %s13_s7 = sshll.u32 %s118_s6, 4  ;;  %p71_p0 = scmp.ne.s32.totalorder %s162_s0, %s70_s10  ;;  %s14_s7 = int_to_ptr.vmem [resolvable:$true] %s13_s7 }
   0x3   :  { %p74_p1 = scmp.lt.u32.totalorder %s70_s10, %s162_s0 }
   0x5   :  { %p76_p2 = pnand %p74_p1, %p71_p0 }
   0x7   :  { %79 = shalt.err (!%p76_p2)
}
   0x8   :  { %s80_s15 = scalar_lea.vmem %s14_s7, 256  ;;  %p85_p4 = scmp.lt.s32.totalorder %s14_s7, %s14_s7 }
   0x9   :  { %p81_p3 = scmp.ne.s32.totalorder %s14_s7, %s80_s15  ;;  %p86_p5 = scmp.lt.s32.totalorder %s80_s15, %s80_s15 }
   0xb   :  { %p87_p6 = por %p86_p5, %p85_p4 }
   0xd   :  { %p88_p7 = pnand %p87_p6, %p81_p3 }
   0xf   :  { %91 = shalt.err (!%p88_p7)
}
  0x10   :  { %s119_s16 = smov 128   ;;  %s120_s17 = smov 8  }
  0x11   :  { %19 = dma.hbm_to_vmem [thread:$0]  %s162_s0, 256, %s14_s7, [#allocation3], %s119_s16, %s119_s16, %s120_s17  }
  0x12   :  { %114 = dma.done.wait [#allocation3], 256  }
  0x13   :  { %115 = vsyncadd [#allocation3], 4294967040  ;;  %v23_v0 = vld [vmem:[#allocation2] sm:$0xff]  ;;  %v24_v1 = vld [vmem:[#allocation2 + $0x8] sm:$0xff]  ;;  %s121_s20 = smov [#allocation5]  }
  0x14   :  { %v25_v2 = vmul.f32 0.6931472, %v23_v0  ;;  %v26_v3 = vmul.f32 0.6931472, %v24_v1  ;;  %s46_s0 = sshll.u32 %s121_s20, 4  ;;  %s47_s0 = int_to_ptr.vmem [resolvable:$true] %s46_s0 }
  0x15   :  { %s92_s21 = scalar_lea.vmem %s47_s0, 256  ;;  %p97_p9 = scmp.lt.s32.totalorder %s47_s0, %s47_s0 }
  0x16   :  { %v27_v4 = vmul.f32 1.442695, %v25_v2  ;;  %v31_v5 = vsub.f32 0.0, %v25_v2  ;;  %v29_v6 = vmul.f32 1.442695, %v26_v3  ;;  %v32_v7 = vsub.f32 0.0, %v26_v3  ;;  %p93_p8 = scmp.ne.s32.totalorder %s47_s0, %s92_s21  ;;  %p98_p10 = scmp.lt.s32.totalorder %s92_s21, %s92_s21 }
  0x18   :  { %62 = vpow2.f32 %v27_v4  ;;  %v33_v8 = vmul.f32 1.442695, %v31_v5  ;;  %v35_v9 = vmul.f32 1.442695, %v32_v7  ;;  %p99_p11 = por %p98_p10, %p97_p9 }
  0x19   :  { %64 = vpow2.f32 %v29_v6 }
  0x1a   :  { %66 = vpow2.f32 %v33_v8  ;;  %p100_p12 = pnand %p99_p11, %p93_p8 }
  0x1b   :  { %68 = vpow2.f32 %v35_v9 }
  0x22   :  { %v63_v10 = vpop.eup %62 }
  0x23   :  { %v65_v11 = vpop.eup %64 }
  0x24   :  { %v67_v12 = vpop.eup %66 }
  0x25   :  { %v69_v13 = vpop.eup %68  ;;  %v37_v14 = vsub.f32 %v63_v10, %v67_v12 }
  0x26   :  { %v38_v15 = vsub.f32 %v65_v11, %v69_v13 }
  0x27   :  { %39 = vst [vmem:[#allocation5] sm:$0xff] %v37_v14 }
  0x28   :  { %40 = vst [vmem:[#allocation5 + $0x8] sm:$0xff] %v38_v15 }
  0x29   :  { %103 = shalt.err (!%p100_p12)
}
  0x2a   :  { %s104_s24 = scalar_lea.hbm %s163_s1, 256 }
  0x2b   :  { %p105_p13 = scmp.ne.s32.totalorder %s163_s1, %s104_s24  ;;  %p108_p0 = scmp.lt.u32.totalorder %s104_s24, %s163_s1 }
  0x2d   :  { %p110_p1 = pnand %p108_p0, %p105_p13 }
  0x2f   :  { %113 = shalt.err (!%p110_p1)
}
  0x30   :  { %52 = dma.vmem_to_hbm [thread:$0]  %s47_s0, 256, %s163_s1, [#allocation4], %s119_s16, %s119_s16, %s120_s17  }
  0x31   :  { %116 = dma.done.wait [#allocation4], 256  }
  0x32   :  { %117 = vsyncadd [#allocation4], 4294967040 }
  0x33   :  { %56 = vsyncpa [#allocation3], 1 }
  0x34   :  { %57 = vsyncpa [#allocation4], 1 }

</bundles_post_ra>
